<compile_context>
chip_gen: v7x
topology: tpu7x:2x2x1
jax: 0.10.0
libtpu: 0.0.40
codegen_flags: <defaults>
</compile_context>

<pallas_src>
import functools

import jax
import jax.numpy as jnp
import numpy as np
from jax.experimental import pallas as pl
from jax.experimental.pallas import tpu as pltpu

_LANES = 128


def _log1p_accurate(x):
    """Accurate log1p from guaranteed-lowerable primitives.

    Kahan's correction: log1p(x) = log(u) * x / (u - 1) with u = fl(1 + x),
    falling back to x when u rounds to 1.  The x/(u-1) correction uses the
    cheap approx EUP reciprocal + one VPU Newton step instead of a full
    multi-pass f32 divide.
    """
    u = 1.0 + x
    d = u - 1.0
    safe_d = jnp.where(d == 0.0, 1.0, d)
    rd = pl.reciprocal(safe_d, approx=True)
    rd = rd * (2.0 - safe_d * rd)          # one Newton step (VPU)
    return jnp.where(d == 0.0, x, jnp.log(u) * (x * rd))


def _sid_kernel(inp_ref, tar_ref, out_ref, *, eps):
    # Upcast after the DMA: bf16 tiles stream from HBM at half the bytes.
    inp = inp_ref[...].astype(jnp.float32)   # (N, TILE_D)
    tar = tar_ref[...].astype(jnp.float32)

    # Column sums over the full leading axis (each tile holds all N rows);
    # (1, TILE_D) reciprocals + VPU multiply instead of N x TILE_D divides.
    inv_inp = pl.reciprocal(jnp.sum(inp, axis=0, keepdims=True), approx=False)
    inv_tar = pl.reciprocal(jnp.sum(tar, axis=0, keepdims=True), approx=False)

    ni = inp * inv_inp
    nt = tar * inv_tar

    # diff-before-eps: (ni + eps) - (nt + eps) == ni - nt exactly.
    diff = ni - nt
    norm_tar = nt + eps

    # 1 / norm_tar via approx EUP reciprocal + one VPU Newton step.
    r = pl.reciprocal(norm_tar, approx=True)
    r = r * (2.0 - norm_tar * r)

    # Fused divergence: (ni_e - nt_e) * log(ni_e / nt_e) = diff * log1p(diff / nt_e)
    log_ratio = _log1p_accurate(diff * r)
    partial = jnp.sum(diff * log_ratio, keepdims=True)            # (1, 1)

    # Lane-dense (1, 128) unmasked store of this tile's partial sum.
    out_ref[...] = jnp.broadcast_to(partial, out_ref.shape)


def _vmem_capacity_bytes() -> int:
    try:
        return int(pltpu.get_tpu_info().vmem_capacity_bytes)
    except Exception:
        return 64 << 20  # v7x-safe fallback


def _choose_tile_d(n: int, d: int, itemsize: int, vmem_budget_bytes: int) -> int:
    """Largest lane-aligned tile width dividing D whose working set fits budget."""
    if d % _LANES != 0:
        return d  # single full-width block (block dims equal full array dims)
    # Per lane of tile width: 2 inputs x 2 pipeline buffers (streamed dtype)
    # + ~6 live f32 (N, TILE_D) elementwise temporaries inside the kernel.
    per_lane = n * (2 * 2 * itemsize + 6 * 4)
    max_tile = (vmem_budget_bytes // max(per_lane, 1)) // _LANES * _LANES
    max_tile = min(max(max_tile, _LANES), d)
    best = _LANES
    for cand in range(_LANES, max_tile + 1, _LANES):
        if d % cand == 0:
            best = cand
    return best


def sid_pallas(inp: jax.Array, target: jax.Array,
               eps: float = 100000.0, tile_d: int | None = None) -> jax.Array:
    assert inp.shape == target.shape and inp.ndim == 2
    # Stream float inputs (f32 / bf16) as-is; only non-float inputs are cast.
    if not jnp.issubdtype(inp.dtype, jnp.floating):
        inp = inp.astype(jnp.float32)
    if not jnp.issubdtype(target.dtype, jnp.floating):
        target = target.astype(jnp.float32)
    n, d = inp.shape
    itemsize = max(inp.dtype.itemsize, target.dtype.itemsize)

    vmem_cap = _vmem_capacity_bytes()
    if tile_d is None:
        tile_d = _choose_tile_d(n, d, itemsize, vmem_budget_bytes=vmem_cap // 2)
        # If the whole array fits one *large* tile, split into two even tiles
        # so the "parallel" D axis can shard across v7x's two TensorCores.
        if tile_d == d and d % (2 * _LANES) == 0 and n * d * itemsize >= (8 << 20):
            tile_d = d // 2
    assert d % tile_d == 0, (d, tile_d)
    grid_d = d // tile_d

    # TODO(synk): for N so large that even an (N, 128) slab exceeds VMEM, a
    # two-pass formulation (pass 1: column sums; pass 2: divergence) is needed;
    # this kernel keeps full-N column slabs per tile.

    kernel = functools.partial(_sid_kernel, eps=float(eps))
    partials = pl.pallas_call(
        kernel,
        out_shape=jax.ShapeDtypeStruct((1, grid_d * _LANES), jnp.float32),
        grid_spec=pltpu.PrefetchScalarGridSpec(
            num_scalar_prefetch=0,
            grid=(grid_d,),
            in_specs=[
                pl.BlockSpec((n, tile_d), lambda j: (0, j)),
                pl.BlockSpec((n, tile_d), lambda j: (0, j)),
            ],
            out_specs=pl.BlockSpec((1, _LANES), lambda j: (0, j)),
        ),
        compiler_params=pltpu.CompilerParams(
            dimension_semantics=("parallel",),
            vmem_limit_bytes=int(vmem_cap * 3 // 4),
        ),
    )(inp, target)

    # Lane 0 of each (1, 128) block carries that tile's partial sum.
    return jnp.sum(partials[0, ::_LANES])


def sid_reference_f64(inp, target, eps=100000.0):
    """Literal PyTorch forward, evaluated in float64 (ground truth)."""
    x = np.asarray(inp, dtype=np.float64)
    t = np.asarray(target, dtype=np.float64)
    ni = x / x.sum(axis=0) + eps
    nt = t / t.sum(axis=0) + eps
    return float(np.sum(ni * np.log(ni / nt) + nt * np.log(nt / ni)))


if __name__ == "__main__":
    key = jax.random.PRNGKey(0)
    k1, k2 = jax.random.split(key)
    # Small spectral-like inputs: 16 pixels (reduced axis) x 1024 bands, positive.
    inp = jax.random.uniform(k1, (16, 1024), dtype=jnp.float32, minval=0.1, maxval=1.0)
    tar = jax.random.uniform(k2, (16, 1024), dtype=jnp.float32, minval=0.1, maxval=1.0)

    ref = sid_reference_f64(np.asarray(inp), np.asarray(tar))

    # Auto tiling: this whole problem fits one tile -> single-step grid.
    out = sid_pallas(inp, tar)
    jax.block_until_ready(out)
    assert jnp.allclose(out, ref, rtol=5e-3, atol=1e-7), (float(out), ref)

    # Also exercise the lane-tiled multi-step grid path (4 steps, pipelined).
    out_tiled = sid_pallas(inp, tar, tile_d=256)
    jax.block_until_ready(out_tiled)
    assert jnp.allclose(out_tiled, ref, rtol=5e-3, atol=1e-7), (float(out_tiled), ref)

    print("KERNEL_OK")
</pallas_src>

<mosaic_0001>
module attributes {stable_mosaic.version = 11 : i64} {
  func.func @_sid_kernel(%arg0: i32, %arg1: memref<16x1024xf32, #tpu.memory_space<vmem>>, %arg2: memref<16x1024xf32, #tpu.memory_space<vmem>>, %arg3: memref<1x128xf32, #tpu.memory_space<vmem>>) attributes {dimension_semantics = [#tpu.dimension_semantics<parallel>], iteration_bounds = array<i64: 1>, scalar_prefetch = 0 : i64, scratch_operands = 0 : i64, tpu.core_type = #tpu.core_type<tc>, window_params = [{transform_indices = @transform_0, window_bounds = array<i64: 16, 1024>}, {transform_indices = @transform_1, window_bounds = array<i64: 16, 1024>}, {transform_indices = @transform_2, window_bounds = array<i64: 1, 128>}]} {
    %c0 = arith.constant 0 : index
    %c0_0 = arith.constant 0 : index
    %0 = vector.load %arg1[%c0, %c0_0] : memref<16x1024xf32, #tpu.memory_space<vmem>>, vector<16x1024xf32>
    %c0_1 = arith.constant 0 : index
    %c0_2 = arith.constant 0 : index
    %1 = vector.load %arg2[%c0_1, %c0_2] : memref<16x1024xf32, #tpu.memory_space<vmem>>, vector<16x1024xf32>
    %cst = arith.constant dense<0.000000e+00> : vector<1024xf32>
    %2 = vector.multi_reduction <add>, %0, %cst [0] : vector<16x1024xf32> to vector<1024xf32>
    %3 = vector.shape_cast %2 : vector<1024xf32> to vector<1x1024xf32>
    %4 = tpu.reciprocal %3 : vector<1x1024xf32> -> vector<1x1024xf32>
    %cst_3 = arith.constant dense<0.000000e+00> : vector<1024xf32>
    %5 = vector.multi_reduction <add>, %1, %cst_3 [0] : vector<16x1024xf32> to vector<1024xf32>
    %6 = vector.shape_cast %5 : vector<1024xf32> to vector<1x1024xf32>
    %7 = tpu.reciprocal %6 : vector<1x1024xf32> -> vector<1x1024xf32>
    %8 = vector.broadcast %4 : vector<1x1024xf32> to vector<16x1024xf32>
    %9 = arith.mulf %0, %8 : vector<16x1024xf32>
    %10 = vector.broadcast %7 : vector<1x1024xf32> to vector<16x1024xf32>
    %11 = arith.mulf %1, %10 : vector<16x1024xf32>
    %12 = arith.subf %9, %11 : vector<16x1024xf32>
    %cst_4 = arith.constant 1.000000e+05 : f32
    %13 = vector.broadcast %cst_4 : f32 to vector<16x1024xf32>
    %14 = arith.addf %11, %13 : vector<16x1024xf32>
    %15 = tpu.reciprocal %14 {approx = true} : vector<16x1024xf32> -> vector<16x1024xf32>
    %16 = arith.mulf %14, %15 : vector<16x1024xf32>
    %cst_5 = arith.constant 2.000000e+00 : f32
    %17 = vector.broadcast %cst_5 : f32 to vector<16x1024xf32>
    %18 = arith.subf %17, %16 : vector<16x1024xf32>
    %19 = arith.mulf %15, %18 : vector<16x1024xf32>
    %20 = arith.mulf %12, %19 : vector<16x1024xf32>
    %cst_6 = arith.constant 1.000000e+00 : f32
    %21 = vector.broadcast %cst_6 : f32 to vector<16x1024xf32>
    %22 = arith.addf %21, %20 : vector<16x1024xf32>
    %cst_7 = arith.constant 1.000000e+00 : f32
    %23 = vector.broadcast %cst_7 : f32 to vector<16x1024xf32>
    %24 = arith.subf %22, %23 : vector<16x1024xf32>
    %cst_8 = arith.constant 0.000000e+00 : f32
    %25 = vector.broadcast %cst_8 : f32 to vector<16x1024xf32>
    %26 = arith.cmpf oeq, %24, %25 : vector<16x1024xf32>
    %cst_9 = arith.constant 1.000000e+00 : f32
    %27 = vector.broadcast %cst_9 : f32 to vector<16x1024xf32>
    %28 = arith.select %26, %27, %24 : vector<16x1024xi1>, vector<16x1024xf32>
    %29 = tpu.reciprocal %28 {approx = true} : vector<16x1024xf32> -> vector<16x1024xf32>
    %30 = arith.mulf %28, %29 : vector<16x1024xf32>
    %cst_10 = arith.constant 2.000000e+00 : f32
    %31 = vector.broadcast %cst_10 : f32 to vector<16x1024xf32>
    %32 = arith.subf %31, %30 : vector<16x1024xf32>
    %33 = arith.mulf %29, %32 : vector<16x1024xf32>
    %cst_11 = arith.constant 0.000000e+00 : f32
    %34 = vector.broadcast %cst_11 : f32 to vector<16x1024xf32>
    %35 = arith.cmpf oeq, %24, %34 : vector<16x1024xf32>
    %36 = math.log %22 : vector<16x1024xf32>
    %37 = arith.mulf %20, %33 : vector<16x1024xf32>
    %38 = arith.mulf %36, %37 : vector<16x1024xf32>
    %39 = arith.select %35, %20, %38 : vector<16x1024xi1>, vector<16x1024xf32>
    %40 = arith.mulf %12, %39 : vector<16x1024xf32>
    %41 = vector.shape_cast %40 : vector<16x1024xf32> to vector<1x16x1024xf32>
    %cst_12 = arith.constant dense<0.000000e+00> : vector<1xf32>
    %42 = vector.multi_reduction <add>, %41, %cst_12 [1, 2] : vector<1x16x1024xf32> to vector<1xf32>
    %43 = vector.shape_cast %42 : vector<1xf32> to vector<1x1x1xf32>
    %44 = vector.extract %43[0, 0, 0] : f32 from vector<1x1x1xf32>
    %45 = vector.broadcast %44 : f32 to vector<1x1xf32>
    %46 = vector.shape_cast %45 : vector<1x1xf32> to vector<1x1xf32>
    %47 = vector.broadcast %46 : vector<1x1xf32> to vector<1x128xf32>
    %c0_13 = arith.constant 0 : index
    %c0_14 = arith.constant 0 : index
    %48 = vector.load %arg3[%c0_13, %c0_14] : memref<1x128xf32, #tpu.memory_space<vmem>>, vector<1x128xf32>
    tpu.vector_store %arg3[%c0_13, %c0_14], %47 {strides = array<i32>} : memref<1x128xf32, #tpu.memory_space<vmem>>, vector<1x128xf32>,
    return
  }
  func.func @transform_0(%arg0: i32) -> (i32, i32) {
    %c0_i32 = arith.constant 0 : i32
    %c0_i32_0 = arith.constant 0 : i32
    return %c0_i32, %arg0 : i32, i32
  }
  func.func @transform_1(%arg0: i32) -> (i32, i32) {
    %c0_i32 = arith.constant 0 : i32
    %c0_i32_0 = arith.constant 0 : i32
    return %c0_i32, %arg0 : i32, i32
  }
  func.func @transform_2(%arg0: i32) -> (i32, i32) {
    %c0_i32 = arith.constant 0 : i32
    %c0_i32_0 = arith.constant 0 : i32
    return %c0_i32, %arg0 : i32, i32
  }
}

</mosaic_0001>

<bundles_post_ra>
// kernel: tpu_custom_call.1
= control target key start
LH: loop header
LB: loop body
LE: loop exit
PB: predicated region body
PF: predicated region fallthrough
CT: control target
= control target key end

     0   :  { %7 = vsyncpa [#allocation3], 0  ;;  %s1548_s0 = inlined_call_operand.hbm [shape: f32[16,1024], index: 0, kind: input, shape index: {}]   ;;  %s1549_s1 = inlined_call_operand.hbm [shape: f32[16,1024], index: 1, kind: input, shape index: {}]   ;;  %s1550_s2 = inlined_call_operand.hbm [shape: f32[1,128], index: 2, kind: output, shape index: {}]  }
   0x1   :  { %8 = vsyncpa [#allocation6], 0 }
   0x2   :  { %9 = vsyncpa [#allocation4], 0  ;;  %s833_s9 = smov [#allocation2]   ;;  %s761_s13 = scalar_lea.hbm %s1548_s0, 2048 }
   0x3   :  { %s15_s10 = sshll.u32 %s833_s9, 4  ;;  %p762_p0 = scmp.ne.s32.totalorder %s1548_s0, %s761_s13  ;;  %s16_s10 = int_to_ptr.vmem [resolvable:$true] %s15_s10 }
   0x4   :  { %p765_p1 = scmp.lt.u32.totalorder %s761_s13, %s1548_s0 }
   0x6   :  { %p767_p2 = pnand %p765_p1, %p762_p0 }
   0x8   :  { %770 = shalt.err (!%p767_p2)
}
   0x9   :  { %s771_s18 = scalar_lea.vmem %s16_s10, 2048  ;;  %p776_p4 = scmp.lt.s32.totalorder %s16_s10, %s16_s10 }
   0xa   :  { %p772_p3 = scmp.ne.s32.totalorder %s16_s10, %s771_s18  ;;  %p777_p5 = scmp.lt.s32.totalorder %s771_s18, %s771_s18 }
   0xc   :  { %p778_p6 = por %p777_p5, %p776_p4 }
   0xe   :  { %p779_p7 = pnand %p778_p6, %p772_p3 }
  0x10   :  { %782 = shalt.err (!%p779_p7)
}
  0x11   :  { %s834_s19 = smov 1024   ;;  %s835_s20 = smov 64  }
  0x12   :  { %21 = dma.hbm_to_vmem [thread:$0]  %s1548_s0, 2048, %s16_s10, [#allocation3], %s834_s19, %s834_s19, %s835_s20  }
  0x13   :  { %s836_s23 = smov [#allocation5]   ;;  %s783_s27 = scalar_lea.hbm %s1549_s1, 2048 }
  0x14   :  { %s27_s24 = sshll.u32 %s836_s23, 4  ;;  %p784_p8 = scmp.ne.s32.totalorder %s1549_s1, %s783_s27  ;;  %s28_s24 = int_to_ptr.vmem [resolvable:$true] %s27_s24 }
  0x15   :  { %p787_p9 = scmp.lt.u32.totalorder %s783_s27, %s1549_s1 }
  0x17   :  { %p789_p10 = pnand %p787_p9, %p784_p8 }
  0x19   :  { %792 = shalt.err (!%p789_p10)
}
  0x1a   :  { %s793_s4 = scalar_lea.vmem %s28_s24, 2048  ;;  %p798_p12 = scmp.lt.s32.totalorder %s28_s24, %s28_s24 }
  0x1b   :  { %p794_p11 = scmp.ne.s32.totalorder %s28_s24, %s793_s4  ;;  %p799_p13 = scmp.lt.s32.totalorder %s793_s4, %s793_s4 }
  0x1d   :  { %p800_p0 = por %p799_p13, %p798_p12 }
  0x1f   :  { %p801_p1 = pnand %p800_p0, %p794_p11 }
  0x21   :  { %804 = shalt.err (!%p801_p1)
}
  0x22   :  { %33 = dma.hbm_to_vmem [thread:$0]  %s1549_s1, 2048, %s28_s24, [#allocation6], %s834_s19, %s834_s19, %s835_s20  }
  0x23   :  { %827 = dma.done.wait [#allocation3], 2048  }
  0x24   :  { %828 = vsyncadd [#allocation3], 4294965248 }
  0x25   :  { %829 = dma.done.wait [#allocation6], 2048  }
  0x26   :  { %830 = vsyncadd [#allocation6], 4294965248  ;;  %v877_v0 = vld [vmem:[#allocation5] sm:$0xff]  ;;  %v881_v2 = vld [vmem:[#allocation5 + $0x8] sm:$0xff]  ;;  %s837_s1 = smov [#allocation7]  }
  0x27   :  { %v879_v1 = vld [vmem:[#allocation5 + $0x40] sm:$0xff]  ;;  %v883_v3 = vld [vmem:[#allocation5 + $0x48] sm:$0xff]  ;;  %v885_v4 = vld [vmem:[#allocation5 + $0x10] sm:$0xff]  ;;  %s600_s6 = sshll.u32 %s837_s1, 4  ;;  %s601_s6 = int_to_ptr.vmem [resolvable:$true] %s600_s6 }
  0x28   :  { %v887_v5 = vld [vmem:[#allocation5 + $0x50] sm:$0xff]  ;;  %v136_v6 = vadd.f32 %v879_v1, %v877_v0  ;;  %v891_v7 = vld [vmem:[#allocation5 + $0x18] sm:$0xff]  ;;  %v143_v9 = vadd.f32 %v883_v3, %v881_v2  ;;  %v897_v10 = vld [vmem:[#allocation5 + $0x20] sm:$0xff]  ;;  %s805_s8 = scalar_lea.vmem %s601_s6, 16  ;;  %s809_s9 = scalar_lea.vmem %s601_s6, 32 }
  0x29   :  { %v893_v8 = vld [vmem:[#allocation5 + $0x58] sm:$0xff]  ;;  %v899_v11 = vld [vmem:[#allocation5 + $0x60] sm:$0xff]  ;;  %v901_v12 = vld [vmem:[#allocation5 + $0x28] sm:$0xff]  ;;  %v150_v14 = vadd.f32 %v887_v5, %v885_v4  ;;  %p806_p2 = scmp.ne.s32.totalorder %s601_s6, %s805_s8  ;;  %p810_p3 = scmp.lt.s32.totalorder %s601_s6, %s601_s6 }
  0x2a   :  { %v903_v13 = vld [vmem:[#allocation5 + $0x68] sm:$0xff]  ;;  %v907_v15 = vld [vmem:[#allocation5 + $0x30] sm:$0xff]  ;;  %v137_v17 = vrot.slane %v136_v6, 4  ;;  %v157_v18 = vadd.f32 %v893_v8, %v891_v7  ;;  %v913_v19 = vld [vmem:[#allocation5 + $0x38] sm:$0xff]  ;;  %v144_v21 = vrot.slane %v143_v9, 4  ;;  %v164_v22 = vadd.f32 %v899_v11, %v897_v10  ;;  %p811_p4 = scmp.lt.s32.totalorder %s809_s9, %s805_s8 }
  0x2b   :  { %v909_v16 = vld [vmem:[#allocation5 + $0x70] sm:$0xff]  ;;  %v915_v20 = vld [vmem:[#allocation5 + $0x78] sm:$0xff]  ;;  %v171_v23 = vadd.f32 %v903_v13, %v901_v12  ;;  %v151_v24 = vrot.slane %v150_v14, 4  ;;  %v925_v31 = vld [vmem:[#allocation2] sm:$0xff] }
  0x2c   :  { %1608 = vst [vmem:[#allocation11_spill] sm:$0xff] %v909_v16  ;;  %1609 = vst [vmem:[#allocation12_spill] sm:$0xff] %v915_v20  ;;  %v178_v25 = vadd.f32 %v909_v16, %v907_v15  ;;  %v138_v26 = vadd.f32 %v137_v17, %v136_v6  ;;  %v158_v27 = vrot.slane %v157_v18, 4  ;;  %v185_v28 = vadd.f32 %v915_v20, %v913_v19  ;;  %v927_v32 = vld [vmem:[#allocation2 + $0x40] sm:$0xff]  ;;  %v929_v34 = vld [vmem:[#allocation2 + $0x8] sm:$0xff]  ;;  %p812_p5 = por %p811_p4, %p810_p3 }
  0x2d   :  { %v145_v29 = vadd.f32 %v144_v21, %v143_v9  ;;  %v165_v30 = vrot.slane %v164_v22, 4  ;;  %1610 = vst [vmem:[#allocation13_spill] sm:$0xff] %v927_v32  ;;  %v172_v33 = vrot.slane %v171_v23, 4  ;;  %v931_v35 = vld [vmem:[#allocation2 + $0x10] sm:$0xff]  ;;  %v933_v36 = vld [vmem:[#allocation2 + $0x48] sm:$0xff]  ;;  %v152_v37 = vadd.f32 %v151_v24, %v150_v14  ;;  %v935_v39 = vld [vmem:[#allocation2 + $0x18] sm:$0xff] }
  0x2e   :  { %1611 = vst [vmem:[#allocation14_spill] sm:$0xff] %v933_v36  ;;  %v179_v38 = vrot.slane %v178_v25, 4  ;;  %v937_v40 = vld [vmem:[#allocation2 + $0x50] sm:$0xff]  ;;  %v939_v41 = vld [vmem:[#allocation2 + $0x58] sm:$0xff]  ;;  %v139_v42 = vrot.slane %v138_v26, 2  ;;  %v159_v43 = vadd.f32 %v158_v27, %v157_v18  ;;  %v186_v44 = vrot.slane %v185_v28, 4  ;;  %p813_p6 = pnand %p812_p5, %p806_p2 }
  0x2f   :  { %1612 = vst [vmem:[#allocation15_spill] sm:$0xff] %v937_v40  ;;  %1613 = vst [vmem:[#allocation16_spill] sm:$0xff] %v939_v41  ;;  %v72_v45 = vadd.f32 %v927_v32, %v925_v31  ;;  %v146_v46 = vrot.slane %v145_v29, 2  ;;  %v166_v47 = vadd.f32 %v165_v30, %v164_v22  ;;  %v943_v48 = vld [vmem:[#allocation2 + $0x20] sm:$0xff]  ;;  %v945_v49 = vld [vmem:[#allocation2 + $0x28] sm:$0xff]  ;;  %v79_v51 = vadd.f32 %v933_v36, %v929_v34 }
  0x30   :  { %1614 = vst [vmem:[#allocation17_spill] sm:$0xff] %v943_v48  ;;  %1615 = vst [vmem:[#allocation18_spill] sm:$0xff] %v945_v49  ;;  %v947_v50 = vld [vmem:[#allocation2 + $0x60] sm:$0xff]  ;;  %v173_v52 = vadd.f32 %v172_v33, %v171_v23  ;;  %v951_v53 = vld [vmem:[#allocation2 + $0x30] sm:$0xff]  ;;  %v86_v56 = vadd.f32 %v937_v40, %v931_v35  ;;  %v93_v57 = vadd.f32 %v939_v41, %v935_v39  ;;  %v153_v58 = vrot.slane %v152_v37, 2 }
  0x31   :  { %1616 = vst [vmem:[#allocation19_spill] sm:$0xff] %v947_v50  ;;  %1617 = vst [vmem:[#allocation20_spill] sm:$0xff] %v951_v53  ;;  %v953_v54 = vld [vmem:[#allocation2 + $0x68] sm:$0xff]  ;;  %v955_v55 = vld [vmem:[#allocation2 + $0x70] sm:$0xff]  ;;  %v180_v59 = vadd.f32 %v179_v38, %v178_v25  ;;  %v140_v60 = vadd.f32 %v139_v42, %v138_v26  ;;  %v160_v61 = vrot.slane %v159_v43, 2  ;;  %v187_v62 = vadd.f32 %v186_v44, %v185_v28 }
  0x32   :  { %1618 = vst [vmem:[#allocation21_spill] sm:$0xff] %v953_v54  ;;  %1619 = vst [vmem:[#allocation22_spill] sm:$0xff] %v955_v55  ;;  %v961_v63 = vld [vmem:[#allocation2 + $0x38] sm:$0xff]  ;;  %v73_v9 = vrot.slane %v72_v45, 4  ;;  %v100_v14 = vadd.f32 %v947_v50, %v943_v48  ;;  %v147_v17 = vadd.f32 %v146_v46, %v145_v29  ;;  %v167_v18 = vrot.slane %v166_v47, 2 }
  0x33   :  { %1620 = vst [vmem:[#allocation23_spill] sm:$0xff] %v961_v63  ;;  %v963_v6 = vld [vmem:[#allocation2 + $0x78] sm:$0xff]  ;;  %v80_v21 = vrot.slane %v79_v51, 4  ;;  %v107_v22 = vadd.f32 %v953_v54, %v945_v49  ;;  %v114_v23 = vadd.f32 %v955_v55, %v951_v53  ;;  %v174_v24 = vrot.slane %v173_v52, 2 }
  0x34   :  { %1621 = vst [vmem:[#allocation24_spill] sm:$0xff] %v963_v6  ;;  %v87_v25 = vrot.slane %v86_v56, 4  ;;  %v94_v26 = vrot.slane %v93_v57, 4  ;;  %v154_v27 = vadd.f32 %v153_v58, %v152_v37  ;;  %v181_v28 = vrot.slane %v180_v59, 2 }
  0x35   :  { %v121_v30 = vadd.f32 %v963_v6, %v961_v63  ;;  %v141_v33 = vrot.slane %v140_v60, 1  ;;  %v161_v38 = vadd.f32 %v160_v61, %v159_v43  ;;  %v188_v42 = vrot.slane %v187_v62, 2 }
  0x36   :  { %v74_v29 = vadd.f32 %v73_v9, %v72_v45  ;;  %v101_v44 = vrot.slane %v100_v14, 4  ;;  %v148_v46 = vrot.slane %v147_v17, 1  ;;  %v168_v50 = vadd.f32 %v167_v18, %v166_v47 }
  0x37   :  { %v81_v41 = vadd.f32 %v80_v21, %v79_v51  ;;  %v108_v54 = vrot.slane %v107_v22, 4  ;;  %v115_v40 = vrot.slane %v114_v23, 4  ;;  %v175_v36 = vadd.f32 %v174_v24, %v173_v52 }
  0x38   :  { %v88_v55 = vadd.f32 %v87_v25, %v86_v56  ;;  %v95_v32 = vadd.f32 %v94_v26, %v93_v57  ;;  %v155_v53 = vrot.slane %v154_v27, 1  ;;  %v182_v20 = vadd.f32 %v181_v28, %v180_v59 }
  0x39   :  { %v122_v37 = vrot.slane %v121_v30, 4  ;;  %v142_v58 = vadd.f32 %v141_v33, %v140_v60  ;;  %v162_v49 = vrot.slane %v161_v38, 1  ;;  %v189_v48 = vadd.f32 %v188_v42, %v187_v62 }
  0x3a   :  { %v75_v6 = vrot.slane %v74_v29, 2  ;;  %v102_v63 = vadd.f32 %v101_v44, %v100_v14  ;;  %v149_v43 = vadd.f32 %v148_v46, %v147_v17  ;;  %v169_v61 = vrot.slane %v168_v50, 1 }
  0x3b   :  { %v82_v45 = vrot.slane %v81_v41, 2  ;;  %v109_v9 = vadd.f32 %v108_v54, %v107_v22  ;;  %v116_v16 = vadd.f32 %v115_v40, %v114_v23  ;;  %v176_v47 = vrot.slane %v175_v36, 1 }
  0x3c   :  { %v89_v51 = vrot.slane %v88_v55, 2  ;;  %v96_v18 = vrot.slane %v95_v32, 2  ;;  %v156_v21 = vadd.f32 %v155_v53, %v154_v27  ;;  %v183_v52 = vrot.slane %v182_v20, 1 }
  0x3d   :  { %v123_v56 = vadd.f32 %v122_v37, %v121_v30  ;;  %v163_v57 = vadd.f32 %v162_v49, %v161_v38  ;;  %v190_v24 = vrot.slane %v189_v48, 1  ;;  %633 = vrcp.f32 %v142_v58 }
  0x3e   :  { %v76_v59 = vadd.f32 %v75_v6, %v74_v29  ;;  %v103_v60 = vrot.slane %v102_v63, 2  ;;  %v170_v25 = vadd.f32 %v169_v61, %v168_v50  ;;  %635 = vrcp.f32 %v149_v43 }
  0x3f   :  { %v83_v62 = vadd.f32 %v82_v45, %v81_v41  ;;  %v110_v14 = vrot.slane %v109_v9, 2  ;;  %v177_v17 = vadd.f32 %v176_v47, %v175_v36  ;;  %v90_v26 = vadd.f32 %v89_v51, %v88_v55 }
  0x40   :  { %v117_v28 = vrot.slane %v116_v16, 2  ;;  %v184_v54 = vadd.f32 %v183_v52, %v182_v20  ;;  %637 = vrcp.f32 %v156_v21  ;;  %v97_v40 = vadd.f32 %v96_v18, %v95_v32 }
  0x41   :  { %v124_v22 = vrot.slane %v123_v56, 2  ;;  %v191_v23 = vadd.f32 %v190_v24, %v189_v48  ;;  %639 = vrcp.f32 %v163_v57  ;;  %v77_v53 = vrot.slane %v76_v59, 1 }
  0x42   :  { %v104_v27 = vadd.f32 %v103_v60, %v102_v63  ;;  %641 = vrcp.f32 %v170_v25  ;;  %v84_v49 = vrot.slane %v83_v62, 1  ;;  %v111_v30 = vadd.f32 %v110_v14, %v109_v9 }
  0x43   :  { %643 = vrcp.f32 %v177_v17  ;;  %v91_v6 = vrot.slane %v90_v26, 1  ;;  %v118_v50 = vadd.f32 %v117_v28, %v116_v16  ;;  %v98_v41 = vrot.slane %v97_v40, 1 }
  0x44   :  { %645 = vrcp.f32 %v184_v54  ;;  %v125_v33 = vadd.f32 %v124_v22, %v123_v56  ;;  %v78_v36 = vadd.f32 %v77_v53, %v76_v59  ;;  %v105_v55 = vrot.slane %v104_v27, 1 }
  0x45   :  { %647 = vrcp.f32 %v191_v23  ;;  %v85_v38 = vadd.f32 %v84_v49, %v83_v62  ;;  %v112_v32 = vrot.slane %v111_v30, 1  ;;  %v92_v48 = vadd.f32 %v91_v6, %v90_v26 }
  0x46   :  { %v119_v29 = vrot.slane %v118_v50, 1  ;;  %v99_v44 = vadd.f32 %v98_v41, %v97_v40  ;;  %v126_v63 = vrot.slane %v125_v33, 1  ;;  %v106_v37 = vadd.f32 %v105_v55, %v104_v27 }
  0x47   :  { %v634_v20 = vpop.eup %633  ;;  %649 = vrcp.f32 %v78_v36  ;;  %v113_v43 = vadd.f32 %v112_v32, %v111_v30  ;;  %v1622_v36 = vld [vmem:[#allocation11_spill] sm:$0xff]  ;;  %v1626_v32 = vld [vmem:[#allocation12_spill] sm:$0xff] }
  0x48   :  { %v636_v42 = vpop.eup %635  ;;  %v974_v58 = vmul.f32 %v634_v20, %v877_v0  ;;  %651 = vrcp.f32 %v85_v38  ;;  %v120_v9 = vadd.f32 %v119_v29, %v118_v50  ;;  %v127_v51 = vadd.f32 %v126_v63, %v125_v33  ;;  %v1628_v29 = vld [vmem:[#allocation23_spill] sm:$0xff]  ;;  %v1629_v63 = vld [vmem:[#allocation13_spill] sm:$0xff] }
  0x49   :  { %v977_v61 = vmul.f32 %v636_v42, %v881_v2  ;;  %653 = vrcp.f32 %v92_v48  ;;  %v1011_v60 = vmul.f32 %v634_v20, %v879_v1  ;;  %v1018_v25 = vmul.f32 %v636_v42, %v883_v3  ;;  %v1627_v48 = vld [vmem:[#allocation20_spill] sm:$0xff] }
  0x4a   :  { %v638_v46 = vpop.eup %637  ;;  %655 = vrcp.f32 %v99_v44  ;;  %v986_v52 = vadd.f32 100000.0, %v974_v58 }
  0x4b   :  { %v640_v16 = vpop.eup %639  ;;  %v980_v18 = vmul.f32 %v638_v46, %v885_v4  ;;  %657 = vrcp.f32 %v106_v37  ;;  %v992_v57 = vadd.f32 100000.0, %v977_v61  ;;  %v1024_v14 = vmul.f32 %v638_v46, %v887_v5 }
  0x4c   :  { %v642_v45 = vpop.eup %641  ;;  %v983_v0 = vmul.f32 %v640_v16, %v891_v7  ;;  %659 = vrcp.f32 %v113_v43  ;;  %v1035_v28 = vmul.f32 %v640_v16, %v893_v8  ;;  %v1038_v54 = vadd.f32 100000.0, %v1011_v60  ;;  %v1630_v43 = vld [vmem:[#allocation14_spill] sm:$0xff] }
  0x4d   :  { %v644_v47 = vpop.eup %643  ;;  %v989_v2 = vmul.f32 %v642_v45, %v897_v10  ;;  %661 = vrcp.f32 %v120_v9  ;;  %v1001_v7 = vadd.f32 100000.0, %v980_v18  ;;  %v1042_v40 = vmul.f32 %v642_v45, %v899_v11  ;;  %v1631_v9 = vld [vmem:[#allocation15_spill] sm:$0xff] }
  0x4e   :  { %v646_v21 = vpop.eup %645  ;;  %v995_v4 = vmul.f32 %v644_v47, %v901_v12  ;;  %663 = vrcp.f32 %v127_v51  ;;  %v1007_v10 = vadd.f32 100000.0, %v983_v0  ;;  %v1045_v22 = vadd.f32 100000.0, %v1018_v25 }
  0x4f   :  { %v648_v56 = vpop.eup %647  ;;  %v998_v24 = vmul.f32 %v646_v21, %v907_v15  ;;  %665 = vrcp.f32 %v986_v52  ;;  %v1014_v12 = vadd.f32 100000.0, %v989_v2  ;;  %v1049_v53 = vadd.f32 100000.0, %v1024_v14 }
  0x50   :  { %v1004_v59 = vmul.f32 %v648_v56, %v913_v19  ;;  %667 = vrcp.f32 %v992_v57  ;;  %v1021_v19 = vadd.f32 100000.0, %v995_v4  ;;  %v1054_v49 = vmul.f32 %v644_v47, %v903_v13 }
  0x51   :  { %v650_v15 = vpop.eup %649  ;;  %v1027_v17 = vadd.f32 100000.0, %v998_v24  ;;  %669 = vrcp.f32 %v1001_v7  ;;  %v1060_v50 = vadd.f32 100000.0, %v1035_v28  ;;  %v1068_v13 = vadd.f32 100000.0, %v1042_v40 }
  0x52   :  { %v652_v62 = vpop.eup %651  ;;  %v1031_v26 = vadd.f32 100000.0, %v1004_v59  ;;  %671 = vrcp.f32 %v1007_v10  ;;  %v200_v27 = vmul.f32 %v650_v15, %v925_v31  ;;  %v1065_v31 = vmul.f32 %v646_v21, %v1622_v36 }
  0x53   :  { %v654_v1 = vpop.eup %653  ;;  %673 = vrcp.f32 %v1014_v12  ;;  %v201_v30 = vmul.f32 %v652_v62, %v929_v34  ;;  %1623 = vst [vmem:[#allocation11_spill] sm:$0xff] %v1068_v13  ;;  %v1624_v34 = vld [vmem:[#allocation17_spill] sm:$0xff]  ;;  %v1074_v42 = vmul.f32 %v648_v56, %v1626_v32  ;;  %v208_v46 = vmul.f32 %v650_v15, %v1629_v63  ;;  %v1632_v56 = vld [vmem:[#allocation16_spill] sm:$0xff]  ;;  %v1633_v32 = vld [vmem:[#allocation19_spill] sm:$0xff] }
  0x54   :  { %v656_v3 = vpop.eup %655  ;;  %675 = vrcp.f32 %v1021_v19  ;;  %v202_v6 = vmul.f32 %v654_v1, %v931_v35  ;;  %v1625_v35 = vld [vmem:[#allocation18_spill] sm:$0xff]  ;;  %v1083_v37 = vadd.f32 100000.0, %v1054_v49  ;;  %v209_v45 = vmul.f32 %v652_v62, %v1630_v43  ;;  %v1634_v62 = vld [vmem:[#allocation21_spill] sm:$0xff] }
  0x55   :  { %v658_v5 = vpop.eup %657  ;;  %677 = vrcp.f32 %v1027_v17  ;;  %v203_v33 = vmul.f32 %v656_v3, %v935_v39  ;;  %v210_v47 = vmul.f32 %v654_v1, %v1631_v9  ;;  %v211_v36 = vmul.f32 %v656_v3, %v1632_v56  ;;  %v1635_v1 = vld [vmem:[#allocation22_spill] sm:$0xff]  ;;  %v1636_v9 = vld [vmem:[#allocation24_spill] sm:$0xff] }
  0x56   :  { %v660_v23 = vpop.eup %659  ;;  %679 = vrcp.f32 %v1031_v26  ;;  %v204_v20 = vmul.f32 %v658_v5, %v1624_v34  ;;  %v1091_v34 = vadd.f32 100000.0, %v1065_v31  ;;  %v1099_v43 = vadd.f32 100000.0, %v1074_v42 }
  0x57   :  { %v662_v8 = vpop.eup %661  ;;  %681 = vrcp.f32 %v1038_v54  ;;  %v205_v38 = vmul.f32 %v660_v23, %v1625_v35  ;;  %v1103_v56 = vsub.f32 %v200_v27, %v974_v58 }
  0x58   :  { %v664_v11 = vpop.eup %663  ;;  %683 = vrcp.f32 %v1045_v22  ;;  %v206_v39 = vmul.f32 %v662_v8, %v1627_v48  ;;  %v212_v48 = vmul.f32 %v658_v5, %v1633_v32  ;;  %v214_v63 = vmul.f32 %v662_v8, %v1635_v1 }
  0x59   :  { %v666_v41 = vpop.eup %665  ;;  %685 = vrcp.f32 %v1049_v53  ;;  %v1079_v44 = vmul.f32 %v664_v11, %v1628_v29  ;;  %v213_v29 = vmul.f32 %v660_v23, %v1634_v62  ;;  %v215_v3 = vmul.f32 %v664_v11, %v1636_v9 }
  0x5a   :  { %v668_v55 = vpop.eup %667  ;;  %687 = vrcp.f32 %v1060_v50  ;;  %v280_v51 = vmul.f32 %v666_v41, %v986_v52  ;;  %v1108_v5 = vsub.f32 %v201_v30, %v977_v61  ;;  %v1111_v23 = vsub.f32 %v208_v46, %v1011_v60 }
  0x5b   :  { %v670_v16 = vpop.eup %669  ;;  %689 = vrcp.f32 %v1068_v13  ;;  %v281_v15 = vmul.f32 %v668_v55, %v992_v57  ;;  %v1115_v11 = vsub.f32 %v209_v45, %v1018_v25  ;;  %v1120_v1 = vsub.f32 %v202_v6, %v980_v18 }
  0x5c   :  { %v672_v21 = vpop.eup %671  ;;  %691 = vrcp.f32 %v1083_v37  ;;  %v282_v57 = vmul.f32 %v670_v16, %v1001_v7  ;;  %1637 = vst [vmem:[#allocation17_spill] sm:$0xff] %v1111_v23  ;;  %v296_v32 = vsub.f32 2.0, %v280_v51  ;;  %v1123_v61 = vsub.f32 %v210_v47, %v1024_v14 }
  0x5d   :  { %v674_v35 = vpop.eup %673  ;;  %v283_v8 = vmul.f32 %v672_v21, %v1007_v10  ;;  %1638 = vst [vmem:[#allocation18_spill] sm:$0xff] %v1115_v11  ;;  %693 = vrcp.f32 %v1091_v34  ;;  %v297_v27 = vsub.f32 2.0, %v281_v15  ;;  %v1128_v25 = vsub.f32 %v203_v33, %v983_v0 }
  0x5e   :  { %v676_v52 = vpop.eup %675  ;;  %v284_v58 = vmul.f32 %v674_v35, %v1014_v12  ;;  %1639 = vst [vmem:[#allocation12_spill] sm:$0xff] %v1123_v61  ;;  %695 = vrcp.f32 %v1099_v43  ;;  %v1131_v30 = vsub.f32 %v211_v36, %v1035_v28  ;;  %v298_v46 = vsub.f32 2.0, %v282_v57 }
  0x5f   :  { %v678_v13 = vpop.eup %677  ;;  %v285_v10 = vmul.f32 %v676_v52, %v1021_v19  ;;  %1640 = vst [vmem:[#allocation20_spill] sm:$0xff] %v1128_v25  ;;  %v1135_v18 = vsub.f32 %v204_v20, %v989_v2  ;;  %v299_v6 = vsub.f32 2.0, %v283_v8  ;;  %v312_v47 = vmul.f32 %v666_v41, %v296_v32 }
  0x60   :  { %v680_v62 = vpop.eup %679  ;;  %1641 = vst [vmem:[#allocation23_spill] sm:$0xff] %v1131_v30  ;;  %v286_v12 = vmul.f32 %v678_v13, %v1027_v17  ;;  %v1139_v19 = vsub.f32 %v212_v48, %v1042_v40  ;;  %v300_v33 = vsub.f32 2.0, %v284_v58  ;;  %v313_v51 = vmul.f32 %v668_v55, %v297_v27 }
  0x61   :  { %v682_v7 = vpop.eup %681  ;;  %1642 = vst [vmem:[#allocation13_spill] sm:$0xff] %v1135_v18  ;;  %v287_v14 = vmul.f32 %v680_v62, %v1031_v26  ;;  %v1143_v36 = vsub.f32 %v205_v38, %v995_v4  ;;  %v1146_v17 = vsub.f32 %v213_v29, %v1054_v49  ;;  %v301_v20 = vsub.f32 2.0, %v285_v10 }
  0x62   :  { %v684_v60 = vpop.eup %683  ;;  %1643 = vst [vmem:[#allocation14_spill] sm:$0xff] %v1139_v19  ;;  %v288_v0 = vmul.f32 %v682_v7, %v1038_v54  ;;  %v1150_v41 = vsub.f32 %v206_v39, %v998_v24  ;;  %v302_v15 = vsub.f32 2.0, %v286_v12  ;;  %v314_v54 = vmul.f32 %v670_v16, %v298_v46  ;;  %v1649_v39 = vld [vmem:[#allocation11_spill] sm:$0xff] }
  0x63   :  { %v686_v45 = vpop.eup %685  ;;  %1644 = vst [vmem:[#allocation15_spill] sm:$0xff] %v1143_v36  ;;  %1645 = vst [vmem:[#allocation16_spill] sm:$0xff] %v1146_v17  ;;  %v289_v2 = vmul.f32 %v684_v60, %v1045_v22  ;;  %v1154_v55 = vsub.f32 %v214_v63, %v1065_v31  ;;  %v303_v48 = vsub.f32 2.0, %v287_v14  ;;  %v315_v4 = vmul.f32 %v672_v21, %v299_v6 }
  0x64   :  { %v688_v28 = vpop.eup %687  ;;  %1646 = vst [vmem:[#allocation19_spill] sm:$0xff] %v1150_v41  ;;  %v290_v40 = vmul.f32 %v686_v45, %v1049_v53  ;;  %v1157_v38 = vmul.f32 %v312_v47, %v1103_v56  ;;  %v304_v29 = vsub.f32 2.0, %v288_v0  ;;  %v316_v9 = vmul.f32 %v674_v35, %v300_v33 }
  0x65   :  { %v690_v26 = vpop.eup %689  ;;  %1647 = vst [vmem:[#allocation21_spill] sm:$0xff] %v1154_v55  ;;  %v291_v22 = vmul.f32 %v688_v28, %v1060_v50  ;;  %v1161_v24 = vmul.f32 %v313_v51, %v1108_v5  ;;  %v1165_v53 = vsub.f32 %v1079_v44, %v1004_v59  ;;  %v305_v16 = vsub.f32 2.0, %v289_v2 }
  0x66   :  { %v692_v49 = vpop.eup %691  ;;  %v292_v31 = vmul.f32 %v690_v26, %v1649_v39  ;;  %v317_v63 = vmul.f32 %v676_v52, %v301_v20  ;;  %v1169_v57 = vsub.f32 %v215_v3, %v1074_v42  ;;  %v306_v8 = vsub.f32 2.0, %v290_v40 }
  0x67   :  { %1648 = vst [vmem:[#allocation22_spill] sm:$0xff] %v1165_v53  ;;  %v694_v21 = vpop.eup %693  ;;  %v318_v32 = vmul.f32 %v678_v13, %v302_v15  ;;  %v1172_v50 = vmul.f32 %v314_v54, %v1120_v1  ;;  %v293_v58 = vmul.f32 %v692_v49, %v1083_v37  ;;  %v319_v27 = vmul.f32 %v680_v62, %v303_v48 }
  0x68   :  { %1650 = vst [vmem:[#allocation24_spill] sm:$0xff] %v1169_v57  ;;  %v696_v35 = vpop.eup %695  ;;  %v1176_v59 = vmul.f32 %v315_v4, %v1128_v25  ;;  %v1179_v44 = vadd.f32 1.0, %v1157_v38  ;;  %v307_v52 = vsub.f32 2.0, %v291_v22  ;;  %v320_v10 = vmul.f32 %v682_v7, %v304_v29 }
  0x69   :  { %v1182_v42 = vmul.f32 %v316_v9, %v1135_v18  ;;  %v1185_v13 = vadd.f32 1.0, %v1161_v24  ;;  %v294_v3 = vmul.f32 %v694_v21, %v1091_v34  ;;  %v308_v12 = vsub.f32 2.0, %v292_v31 }
  0x6a   :  { %v321_v46 = vmul.f32 %v684_v60, %v305_v16  ;;  %v1189_v37 = vmul.f32 %v317_v63, %v1143_v36  ;;  %v295_v62 = vmul.f32 %v696_v35, %v1099_v43  ;;  %v322_v14 = vmul.f32 %v686_v45, %v306_v8 }
  0x6b   :  { %v1193_v6 = vmul.f32 %v318_v32, %v1150_v41  ;;  %v1196_v7 = vadd.f32 1.0, %v1172_v50  ;;  %v309_v47 = vsub.f32 2.0, %v293_v58  ;;  %v1199_v0 = vmul.f32 %v319_v27, %v1165_v53 }
  0x6c   :  { %v1202_v34 = vadd.f32 1.0, %v1176_v59  ;;  %v1205_v60 = vadd.f32 -1.0, %v1179_v44  ;;  %v323_v33 = vmul.f32 %v688_v28, %v307_v52  ;;  %v1208_v43 = vmul.f32 %v320_v10, %v1111_v23 }
  0x6d   :  { %v1211_v45 = vadd.f32 1.0, %v1182_v42  ;;  %v1214_v51 = vadd.f32 -1.0, %v1185_v13  ;;  %v310_v2 = vsub.f32 2.0, %v294_v3  ;;  %v324_v20 = vmul.f32 %v690_v26, %v308_v12 }
  0x6e   :  { %1651 = vst [vmem:[#allocation11_spill] sm:$0xff] %v1208_v43  ;;  %v1217_v40 = vmul.f32 %v321_v46, %v1115_v11  ;;  %v1220_v15 = vadd.f32 1.0, %v1189_v37  ;;  %v311_v54 = vsub.f32 2.0, %v295_v62  ;;  %v1223_v28 = vmul.f32 %v322_v14, %v1123_v61 }
  0x6f   :  { %v1226_v48 = vadd.f32 1.0, %v1193_v6  ;;  %v1229_v4 = vadd.f32 -1.0, %v1196_v7  ;;  %v325_v22 = vmul.f32 %v692_v49, %v309_v47  ;;  %v1232_v29 = vadd.f32 1.0, %v1199_v0 }
  0x70   :  { %1652 = vst [vmem:[#allocation25_spill] sm:$0xff] %v1217_v40  ;;  %1653 = vst [vmem:[#allocation26_spill] sm:$0xff] %v1223_v28  ;;  %v1235_v26 = vadd.f32 -1.0, %v1202_v34  ;;  %vm376_vm0 = vcmp.eq.f32.partialorder %v1205_v60, 0.0  ;;  %v1239_v9 = vmul.f32 %v323_v33, %v1131_v30  ;;  %v1242_v39 = vadd.f32 1.0, %v1208_v43 }
  0x71   :  { %v1245_v31 = vadd.f32 -1.0, %v1211_v45  ;;  %vm377_vm1 = vcmp.eq.f32.partialorder %v1214_v51, 0.0  ;;  %v326_v49 = vmul.f32 %v694_v21, %v310_v2  ;;  %v1249_v16 = vmul.f32 %v324_v20, %v1139_v19 }
  0x72   :  { %1654 = vst [vmem:[#allocation27_spill] sm:$0xff] %v1239_v9  ;;  %v1252_v63 = vadd.f32 1.0, %v1217_v40  ;;  %v1255_v8 = vadd.f32 -1.0, %v1220_v15  ;;  %v1258_v32 = vadd.f32 1.0, %v1223_v28  ;;  %v1261_v58 = vadd.f32 -1.0, %v1226_v48 }
  0x73   :  { %1655 = vst [vmem:[#allocation28_spill] sm:$0xff] %v1245_v31  ;;  %1656 = vst [vmem:[#allocation29_spill] sm:$0xff] %v1249_v16  ;;  %vm378_vm2 = vcmp.eq.f32.partialorder %v1229_v4, 0.0  ;;  %v392_v21 = vsel %vm376_vm0, 1.0, %v1205_v60  ;;  %v327_v27 = vmul.f32 %v696_v35, %v311_v54  ;;  %v1268_v52 = vadd.f32 -1.0, %v1232_v29 }
  0x74   :  { %1657 = vst [vmem:[#allocation30_spill] sm:$0xff] %v1255_v8  ;;  %1658 = vst [vmem:[#allocation31_spill] sm:$0xff] %v1261_v58  ;;  %vm379_vm3 = vcmp.eq.f32.partialorder %v1235_v26, 0.0  ;;  %v393_v10 = vsel %vm377_vm1, 1.0, %v1214_v51  ;;  %v1275_v3 = vmul.f32 %v325_v22, %v1146_v17  ;;  %v1278_v12 = vadd.f32 1.0, %v1239_v9 }
  0x75   :  { %1659 = vst [vmem:[#allocation32_spill] sm:$0xff] %v1268_v52  ;;  %v1281_v46 = vadd.f32 -1.0, %v1242_v39  ;;  %vm380_vm4 = vcmp.eq.f32.partialorder %v1245_v31, 0.0  ;;  %v1285_v35 = vadd.f32 -1.0, %v1252_v63  ;;  %vm381_vm5 = vcmp.eq.f32.partialorder %v1255_v8, 0.0 }
  0x76   :  { %1660 = vst [vmem:[#allocation33_spill] sm:$0xff] %v1275_v3  ;;  %v394_v62 = vsel %vm378_vm2, 1.0, %v1229_v4  ;;  %697 = vrcp.f32 %v392_v21  ;;  %v1292_v14 = vadd.f32 -1.0, %v1258_v32  ;;  %vm382_vm6 = vcmp.eq.f32.partialorder %v1261_v58, 0.0 }
  0x77   :  { %1661 = vst [vmem:[#allocation34_spill] sm:$0xff] %v1281_v46  ;;  %1662 = vst [vmem:[#allocation35_spill] sm:$0xff] %v1285_v35  ;;  %v395_v47 = vsel %vm379_vm3, 1.0, %v1235_v26  ;;  %699 = vrcp.f32 %v393_v10  ;;  %v1299_v33 = vmul.f32 %v326_v49, %v1154_v55  ;;  %v1302_v2 = vadd.f32 1.0, %v1249_v16 }
  0x78   :  { %1663 = vst [vmem:[#allocation36_spill] sm:$0xff] %v1292_v14  ;;  %vm383_vm7 = vcmp.eq.f32.partialorder %v1268_v52, 0.0  ;;  %v396_v20 = vsel %vm380_vm4, 1.0, %v1245_v31  ;;  %v1309_v54 = vadd.f32 1.0, %v1275_v3  ;;  %vm384_vm8 = vcmp.eq.f32.partialorder %v1281_v46, 0.0 }
  0x79   :  { %1664 = vst [vmem:[#allocation37_spill] sm:$0xff] %v1299_v33  ;;  %v397_v22 = vsel %vm381_vm5, 1.0, %v1255_v8  ;;  %701 = vrcp.f32 %v394_v62  ;;  %v1316_v49 = vadd.f32 -1.0, %v1278_v12  ;;  %vm385_vm9 = vcmp.eq.f32.partialorder %v1285_v35, 0.0 }
  0x7a   :  { %v398_v55 = vsel %vm382_vm6, 1.0, %v1261_v58  ;;  %703 = vrcp.f32 %v395_v47  ;;  %vm386_vm10 = vcmp.eq.f32.partialorder %v1292_v14, 0.0  ;;  %v1326_v17 = vsel %vm383_vm7, 1.0, %v1268_v52 }
  0x7b   :  { %1665 = vst [vmem:[#allocation38_spill] sm:$0xff] %v1316_v49  ;;  %705 = vrcp.f32 %v396_v20  ;;  %v1329_v19 = vmul.f32 %v327_v27, %v1169_v57  ;;  %v1332_v30 = vadd.f32 -1.0, %v1302_v2  ;;  %v1337_v61 = vsel %vm384_vm8, 1.0, %v1281_v46 }
  0x7c   :  { %707 = vrcp.f32 %v397_v22  ;;  %v1340_v11 = vadd.f32 1.0, %v1299_v33  ;;  %v1345_v23 = vsel %vm385_vm9, 1.0, %v1285_v35  ;;  %v1348_v27 = vadd.f32 -1.0, %v1309_v54 }
  0x7d   :  { %1666 = vst [vmem:[#allocation39_spill] sm:$0xff] %v1329_v19  ;;  %1667 = vst [vmem:[#allocation40_spill] sm:$0xff] %v1332_v30  ;;  %709 = vrcp.f32 %v398_v55  ;;  %vm387_vm11 = vcmp.eq.f32.partialorder %v1316_v49, 0.0  ;;  %v1354_v57 = vsel %vm386_vm10, 1.0, %v1292_v14  ;;  %v1359_v3 = vadd.f32 1.0, %v1329_v19 }
  0x7e   :  { %1668 = vst [vmem:[#allocation41_spill] sm:$0xff] %v1348_v27  ;;  %711 = vrcp.f32 %v1326_v17  ;;  %vm388_vm12 = vcmp.eq.f32.partialorder %v1332_v30, 0.0  ;;  %v1366_v53 = vsel %vm387_vm11, 1.0, %v1316_v49  ;;  %v1370_v14 = vadd.f32 -1.0, %v1340_v11 }
  0x7f   :  { %713 = vrcp.f32 %v1337_v61  ;;  %1669 = vst [vmem:[#allocation42_spill] sm:$0xff] %v1359_v3  ;;  %vm389_vm13 = vcmp.eq.f32.partialorder %v1348_v27, 0.0  ;;  %v1377_v46 = vsel %vm388_vm12, 1.0, %v1332_v30  ;;  %v1381_v49 = vadd.f32 -1.0, %v1359_v3 }
  0x80   :  { %v698_v33 = vpop.eup %697  ;;  %715 = vrcp.f32 %v1345_v23  ;;  %1670 = vst [vmem:[#allocation43_spill] sm:$0xff] %v1370_v14  ;;  %vm390_vm14 = vcmp.eq.f32.partialorder %v1370_v14, 0.0 }
  0x81   :  { %v700_v35 = vpop.eup %699  ;;  %717 = vrcp.f32 %v1354_v57  ;;  %1671 = vst [vmem:[#allocation44_spill] sm:$0xff] %v1381_v49  ;;  %v424_v41 = vmul.f32 %v698_v33, %v392_v21  ;;  %vm391_vm15 = vcmp.eq.f32.partialorder %v1381_v49, 0.0 }
  0x82   :  { %719 = vlog2.f32 %v1179_v44  ;;  %v425_v52 = vmul.f32 %v700_v35, %v393_v10  ;;  %v1387_v44 = vsel %vm389_vm13, 1.0, %v1348_v27 }
  0x83   :  { %v702_v19 = vpop.eup %701  ;;  %721 = vlog2.f32 %v1185_v13  ;;  %v440_v10 = vsub.f32 2.0, %v424_v41  ;;  %v1409_v41 = vsel %vm391_vm15, 1.0, %v1381_v49 }
  0x84   :  { %v704_v16 = vpop.eup %703  ;;  %723 = vrcp.f32 %v1366_v53  ;;  %v426_v13 = vmul.f32 %v702_v19, %v394_v62  ;;  %v441_v27 = vsub.f32 2.0, %v425_v52 }
  0x85   :  { %v706_v9 = vpop.eup %705  ;;  %725 = vlog2.f32 %v1196_v7  ;;  %v427_v58 = vmul.f32 %v704_v16, %v395_v47  ;;  %v1398_v7 = vsel %vm390_vm14, 1.0, %v1370_v14 }
  0x86   :  { %v708_v30 = vpop.eup %707  ;;  %727 = vrcp.f32 %v1377_v46  ;;  %v428_v18 = vmul.f32 %v706_v9, %v396_v20  ;;  %v456_v20 = vmul.f32 %v698_v33, %v440_v10  ;;  %v1674_v26 = vld [vmem:[#allocation42_spill] sm:$0xff] }
  0x87   :  { %v710_v36 = vpop.eup %709  ;;  %729 = vlog2.f32 %v1202_v34  ;;  %v429_v47 = vmul.f32 %v708_v30, %v397_v22  ;;  %v442_v34 = vsub.f32 2.0, %v426_v13  ;;  %v443_v40 = vsub.f32 2.0, %v427_v58 }
  0x88   :  { %v712_v21 = vpop.eup %711  ;;  %731 = vrcp.f32 %v1387_v44  ;;  %v430_v52 = vmul.f32 %v710_v36, %v398_v55  ;;  %v444_v13 = vsub.f32 2.0, %v428_v18 }
  0x89   :  { %v714_v28 = vpop.eup %713  ;;  %733 = vlog2.f32 %v1211_v45  ;;  %v457_v45 = vmul.f32 %v700_v35, %v441_v27  ;;  %v431_v22 = vmul.f32 %v712_v21, %v1326_v17  ;;  %v445_v3 = vsub.f32 2.0, %v429_v47 }
  0x8a   :  { %v1401_v62 = vpop.eup %715  ;;  %735 = vlog2.f32 %v1220_v15  ;;  %v432_v49 = vmul.f32 %v714_v28, %v1337_v61  ;;  %v458_v55 = vmul.f32 %v702_v19, %v442_v34  ;;  %v446_v33 = vsub.f32 2.0, %v430_v52 }
  0x8b   :  { %v1404_v8 = vpop.eup %717  ;;  %737 = vrcp.f32 %v1398_v7  ;;  %v433_v31 = vmul.f32 %v1401_v62, %v1345_v23  ;;  %v459_v35 = vmul.f32 %v704_v16, %v443_v40  ;;  %v504_v27 = vmul.f32 %v456_v20, %v1157_v38 }
  0x8c   :  { %v720_v14 = vpop.eup %719  ;;  %739 = vlog2.f32 %v1226_v48  ;;  %v505_v10 = vmul.f32 %v457_v45, %v1161_v24  ;;  %v434_v61 = vmul.f32 %v1404_v8, %v1354_v57  ;;  %v447_v19 = vsub.f32 2.0, %v431_v22 }
  0x8d   :  { %v722_v25 = vpop.eup %721  ;;  %741 = vrcp.f32 %v1409_v41  ;;  %v473_v18 = vmul.f32 0.6931472, %v720_v14  ;;  %v460_v47 = vmul.f32 %v706_v9, %v444_v13  ;;  %v448_v40 = vsub.f32 2.0, %v432_v49 }
  0x8e   :  { %v1414_v15 = vpop.eup %723  ;;  %743 = vlog2.f32 %v1232_v29  ;;  %v475_v48 = vmul.f32 0.6931472, %v722_v25  ;;  %v461_v29 = vmul.f32 %v708_v30, %v445_v3  ;;  %v506_v14 = vmul.f32 %v458_v55, %v1172_v50 }
  0x8f   :  { %v726_v58 = vpop.eup %725  ;;  %745 = vlog2.f32 %v1242_v39  ;;  %v435_v34 = vmul.f32 %v1414_v15, %v1366_v53  ;;  %v449_v52 = vsub.f32 2.0, %v433_v31  ;;  %v462_v20 = vmul.f32 %v710_v36, %v446_v33 }
  0x90   :  { %v1421_v17 = vpop.eup %727  ;;  %v477_v16 = vmul.f32 0.6931472, %v726_v58  ;;  %747 = vlog2.f32 %v1252_v63  ;;  %v507_v9 = vmul.f32 %v459_v35, %v1176_v59  ;;  %v520_v39 = vmul.f32 %v504_v27, %v473_v18 }
  0x91   :  { %v730_v43 = vpop.eup %729  ;;  %v521_v22 = vmul.f32 %v505_v10, %v475_v48  ;;  %v436_v30 = vmul.f32 %v1421_v17, %v1377_v46  ;;  %v450_v3 = vsub.f32 2.0, %v434_v61  ;;  %v463_v49 = vmul.f32 %v712_v21, %v447_v19 }
  0x92   :  { %v1428_v23 = vpop.eup %731  ;;  %v479_v45 = vmul.f32 0.6931472, %v730_v43  ;;  %749 = vlog2.f32 %v1258_v32  ;;  %v464_v53 = vmul.f32 %v714_v28, %v448_v40  ;;  %v508_v36 = vmul.f32 %v460_v47, %v1182_v42 }
  0x93   :  { %v734_v25 = vpop.eup %733  ;;  %v522_v63 = vmul.f32 %v506_v14, %v477_v16  ;;  %v437_v43 = vmul.f32 %v1428_v23, %v1387_v44  ;;  %v451_v58 = vsub.f32 2.0, %v435_v34  ;;  %751 = vlog2.f32 %v1278_v12  ;;  %v1675_v34 = vld [vmem:[#allocation20_spill] sm:$0xff] }
  0x94   :  { %v736_v57 = vpop.eup %735  ;;  %v481_v31 = vmul.f32 0.6931472, %v734_v25  ;;  %v509_v21 = vmul.f32 %v461_v29, %v1189_v37  ;;  %v523_v32 = vmul.f32 %v507_v9, %v479_v45  ;;  %v536_v28 = vsel %vm376_vm0, %v1157_v38, %v520_v39 }
  0x95   :  { %v1438_v13 = vpop.eup %737  ;;  %v483_v33 = vmul.f32 0.6931472, %v736_v57  ;;  %v537_v35 = vsel %vm377_vm1, %v1161_v24, %v521_v22  ;;  %v452_v48 = vsub.f32 2.0, %v436_v30  ;;  %v465_v12 = vmul.f32 %v1401_v62, %v449_v52  ;;  %v1678_v30 = vld [vmem:[#allocation13_spill] sm:$0xff] }
  0x96   :  { %v740_v55 = vpop.eup %739  ;;  %v438_v44 = vmul.f32 %v1438_v13, %v1398_v7  ;;  %753 = vlog2.f32 %v1302_v2  ;;  %v510_v10 = vmul.f32 %v462_v20, %v1193_v6  ;;  %v524_v61 = vmul.f32 %v508_v36, %v481_v31 }
  0x97   :  { %v1444_v46 = vpop.eup %741  ;;  %v485_v27 = vmul.f32 0.6931472, %v740_v55  ;;  %v538_v38 = vsel %vm378_vm2, %v1172_v50, %v522_v63  ;;  %v466_v24 = vmul.f32 %v1404_v8, %v450_v3  ;;  %755 = vlog2.f32 %v1309_v54  ;;  %v1672_v54 = vld [vmem:[#allocation11_spill] sm:$0xff] }
  0x98   :  { %v744_v18 = vpop.eup %743  ;;  %v552_v51 = vmul.f32 %v536_v28, %v1103_v56  ;;  %v553_v7 = vmul.f32 %v537_v35, %v1108_v5  ;;  %v511_v2 = vmul.f32 %v463_v49, %v1199_v0  ;;  %v525_v19 = vmul.f32 %v509_v21, %v483_v33 }
  0x99   :  { %v746_v60 = vpop.eup %745  ;;  %v487_v62 = vmul.f32 0.6931472, %v744_v18  ;;  %v539_v47 = vsel %vm379_vm3, %v1176_v59, %v523_v32  ;;  %v439_v50 = vmul.f32 %v1444_v46, %v1409_v41  ;;  %v453_v4 = vsub.f32 2.0, %v437_v43 }
  0x9a   :  { %v748_v40 = vpop.eup %747  ;;  %757 = vlog2.f32 %v1340_v11  ;;  %v554_v8 = vmul.f32 %v538_v38, %v1120_v1  ;;  %v489_v56 = vmul.f32 0.6931472, %v746_v60  ;;  %v512_v5 = vmul.f32 %v464_v53, %v1672_v54  ;;  %v1676_v11 = vld [vmem:[#allocation25_spill] sm:$0xff]  ;;  %v1679_v53 = vld [vmem:[#allocation26_spill] sm:$0xff] }
  0x9b   :  { %v526_v29 = vmul.f32 %v510_v10, %v485_v27  ;;  %v540_v14 = vsel %vm380_vm4, %v1182_v42, %v524_v61  ;;  %v467_v59 = vmul.f32 %v1414_v15, %v451_v58  ;;  %759 = vlog2.f32 %v1674_v26  ;;  %v1684_v10 = vld [vmem:[#allocation19_spill] sm:$0xff]  ;;  %v1685_v60 = vld [vmem:[#allocation29_spill] sm:$0xff] }
  0x9c   :  { %v750_v25 = vpop.eup %749  ;;  %v555_v41 = vmul.f32 %v539_v47, %v1675_v34  ;;  %v568_v52 = vadd.f32 %v553_v7, %v552_v51  ;;  %v491_v20 = vmul.f32 0.6931472, %v748_v40  ;;  %v513_v57 = vmul.f32 %v465_v12, %v1676_v11 }
  0x9d   :  { %v527_v1 = vmul.f32 %v511_v2, %v487_v62  ;;  %v541_v9 = vsel %vm381_vm5, %v1189_v37, %v525_v19  ;;  %v752_v39 = vpop.eup %751  ;;  %v454_v22 = vsub.f32 2.0, %v438_v44  ;;  %v468_v42 = vmul.f32 %v1421_v17, %v452_v48  ;;  %v1681_v37 = vld [vmem:[#allocation15_spill] sm:$0xff]  ;;  %v1687_v19 = vld [vmem:[#allocation22_spill] sm:$0xff] }
  0x9e   :  { %v556_v3 = vmul.f32 %v540_v14, %v1678_v30  ;;  %v569_v15 = vadd.f32 %v568_v52, %v554_v8  ;;  %v493_v49 = vmul.f32 0.6931472, %v750_v25  ;;  %v514_v31 = vmul.f32 %v466_v24, %v1679_v53  ;;  %v1682_v17 = vld [vmem:[#allocation27_spill] sm:$0xff] }
  0x9f   :  { %v528_v36 = vmul.f32 %v512_v5, %v489_v56  ;;  %v542_v55 = vsel %vm382_vm6, %v1193_v6, %v526_v29  ;;  %v455_v58 = vsub.f32 2.0, %v439_v50  ;;  %v469_v33 = vmul.f32 %v1428_v23, %v453_v4  ;;  %v1688_v50 = vld [vmem:[#allocation33_spill] sm:$0xff] }
  0xa0   :  { %v754_v43 = vpop.eup %753  ;;  %v557_v21 = vmul.f32 %v541_v9, %v1681_v37  ;;  %v570_v32 = vadd.f32 %v569_v15, %v555_v41  ;;  %v495_v28 = vmul.f32 0.6931472, %v752_v39  ;;  %v515_v35 = vmul.f32 %v467_v59, %v1682_v17  ;;  %v1690_v29 = vld [vmem:[#allocation17_spill] sm:$0xff]  ;;  %v1693_v41 = vld [vmem:[#allocation18_spill] sm:$0xff] }
  0xa1   :  { %v529_v18 = vmul.f32 %v513_v57, %v491_v20  ;;  %v543_v48 = vsel %vm383_vm7, %v1199_v0, %v527_v1  ;;  %v756_v12 = vpop.eup %755  ;;  %v470_v27 = vmul.f32 %v1438_v13, %v454_v22  ;;  %v558_v6 = vmul.f32 %v542_v55, %v1684_v10  ;;  %v1694_v1 = vld [vmem:[#allocation39_spill] sm:$0xff]  ;;  %v1696_v22 = vld [vmem:[#allocation12_spill] sm:$0xff] }
  0xa2   :  { %v571_v61 = vadd.f32 %v570_v32, %v556_v3  ;;  %v497_v38 = vmul.f32 0.6931472, %v754_v43  ;;  %v516_v23 = vmul.f32 %v468_v42, %v1685_v60  ;;  %v530_v24 = vmul.f32 %v514_v31, %v493_v49  ;;  %v1705_v10 = vld [vmem:[#allocation24_spill] sm:$0xff] }
  0xa3   :  { %v544_v7 = vsel %vm384_vm8, %v1672_v54, %v528_v36  ;;  %v471_v2 = vmul.f32 %v1444_v46, %v455_v58  ;;  %v559_v47 = vmul.f32 %v543_v48, %v1687_v19  ;;  %v499_v40 = vmul.f32 0.6931472, %v756_v12  ;;  %v1691_v54 = vld [vmem:[#allocation37_spill] sm:$0xff]  ;;  %v1700_v58 = vld [vmem:[#allocation14_spill] sm:$0xff] }
  0xa4   :  { %v758_v62 = vpop.eup %757  ;;  %v572_v0 = vadd.f32 %v571_v61, %v557_v21  ;;  %v517_v13 = vmul.f32 %v469_v33, %v1688_v50  ;;  %v531_v4 = vmul.f32 %v515_v35, %v495_v28  ;;  %v545_v56 = vsel %vm385_vm9, %v1676_v11, %v529_v18  ;;  %v1702_v28 = vld [vmem:[#allocation16_spill] sm:$0xff]  ;;  %v1704_v48 = vld [vmem:[#allocation21_spill] sm:$0xff] }
  0xa5   :  { %v760_v5 = vpop.eup %759  ;;  %v560_v16 = vmul.f32 %v544_v7, %v1690_v29  ;;  %v501_v25 = vmul.f32 0.6931472, %v758_v62  ;;  %v518_v59 = vmul.f32 %v470_v27, %v1691_v54  ;;  %v532_v26 = vmul.f32 %v516_v23, %v497_v38 }
  0xa6   :  { %v573_v14 = vadd.f32 %v572_v0, %v558_v6  ;;  %v546_v34 = vsel %vm386_vm10, %v1679_v53, %v530_v24  ;;  %v561_v52 = vmul.f32 %v545_v56, %v1693_v41  ;;  %v503_v57 = vmul.f32 0.6931472, %v760_v5  ;;  %v1698_v53 = vld [vmem:[#allocation23_spill] sm:$0xff] }
  0xa7   :  { %v519_v45 = vmul.f32 %v471_v2, %v1694_v1  ;;  %v533_v9 = vmul.f32 %v517_v13, %v499_v40  ;;  %v547_v39 = vsel %vm387_vm11, %v1682_v17, %v531_v4  ;;  %v562_v42 = vmul.f32 %v546_v34, %v1696_v22 }
  0xa8   :  { %v574_v20 = vadd.f32 %v573_v14, %v559_v47  ;;  %v534_v3 = vmul.f32 %v518_v59, %v501_v25  ;;  %v548_v49 = vsel %vm388_vm12, %v1685_v60, %v532_v26  ;;  %v563_v31 = vmul.f32 %v547_v39, %v1698_v53 }
  0xa9   :  { %v535_v63 = vmul.f32 %v519_v45, %v503_v57  ;;  %v549_v43 = vsel %vm389_vm13, %v1688_v50, %v533_v9  ;;  %v564_v33 = vmul.f32 %v548_v49, %v1700_v58 }
  0xaa   :  { %v575_v30 = vadd.f32 %v574_v20, %v560_v16  ;;  %v550_v32 = vsel %vm390_vm14, %v1691_v54, %v534_v3  ;;  %v565_v17 = vmul.f32 %v549_v43, %v1702_v28 }
  0xab   :  { %v551_v44 = vsel %vm391_vm15, %v1694_v1, %v535_v63  ;;  %v566_v12 = vmul.f32 %v550_v32, %v1704_v48 }
  0xac   :  { %v576_v36 = vadd.f32 %v575_v30, %v561_v52  ;;  %v567_v6 = vmul.f32 %v551_v44, %v1705_v10 }
  0xae   :  { %v577_v37 = vadd.f32 %v576_v36, %v562_v42 }
  0xb0   :  { %v578_v35 = vadd.f32 %v577_v37, %v563_v31 }
  0xb2   :  { %v579_v27 = vadd.f32 %v578_v35, %v564_v33 }
  0xb4   :  { %v580_v61 = vadd.f32 %v579_v27, %v565_v17 }
  0xb6   :  { %v581_v38 = vadd.f32 %v580_v61, %v566_v12 }
  0xb8   :  { %v582_v60 = vadd.f32 %v581_v38, %v567_v6 }
  0xba   :  { %583 = vadd.xlane.f32.xlu0 %v582_v60 }
 0x147   :  { %v584_v23 = vpop.xlane.xlu0 %583 }
 0x148   :  { %v585_v24 = vrot.slane %v584_v23, 4 }
 0x14a   :  { %v586_v51 = vadd.f32 %v585_v24, %v584_v23 }
 0x14c   :  { %v587_v7 = vrot.slane %v586_v51, 2 }
 0x14e   :  { %v588_v62 = vadd.f32 %v587_v7, %v586_v51 }
 0x150   :  { %v589_v2 = vrot.slane %v588_v62, 1 }
 0x152   :  { %v590_v19 = vadd.f32 %v589_v2, %v588_v62 }
 0x154   :  { %626 = vpush %v590_v19 }
 0x185   :  { %s627_s7 = spop %626 }
 0x186   :  { %v592_v47 = vstv %s627_s7 }
 0x187   :  { %593 = vst [vmem:[#allocation7] sm:$0x1] %v592_v47 }
 0x188   :  { %816 = shalt.err (!%p813_p6)
}
 0x189   :  { %s817_s12 = scalar_lea.hbm %s1550_s2, 16 }
 0x18a   :  { %p818_p7 = scmp.ne.s32.totalorder %s1550_s2, %s817_s12  ;;  %p821_p8 = scmp.lt.u32.totalorder %s817_s12, %s1550_s2 }
 0x18c   :  { %p823_p9 = pnand %p821_p8, %p818_p7 }
 0x18e   :  { %826 = shalt.err (!%p823_p9)
}
 0x18f   :  { %603 = dma.vmem_to_hbm [thread:$0]  %s601_s6, 16, %s1550_s2, [#allocation4]  }
 0x190   :  { %831 = dma.done.wait [#allocation4], 16  }
 0x191   :  { %832 = vsyncadd [#allocation4], 4294967280 }
 0x192   :  { %607 = vsyncpa [#allocation3], 1 }
 0x193   :  { %608 = vsyncpa [#allocation6], 1 }
 0x194   :  { %609 = vsyncpa [#allocation4], 1 }

</bundles_post_ra>
